<compile_context>
chip_gen: v7x
topology: tpu7x:2x2x1
jax: 0.10.0
libtpu: 0.0.40
codegen_flags: <defaults>
</compile_context>

<pallas_src>
import functools

import jax
import jax.numpy as jnp
from jax import lax
from jax.experimental import pallas as pl
from jax.experimental.pallas import tpu as pltpu


def _round_up(x, m):
    return (x + m - 1) // m * m


def _sublane_multiple(dtype):
    return {4: 8, 2: 16, 1: 32}.get(jnp.dtype(dtype).itemsize, 8)


def _vmem_capacity_bytes():
    try:
        return int(pltpu.get_tpu_info().vmem_capacity_bytes)
    except Exception:
        return 64 * 1024 * 1024  # conservative fallback (v7x per-TensorCore)


def _tile_vmem_bytes(tm, tn, tk, in_isz, out_isz):
    # Double-buffered input/output tiles + resident f32 accumulator.
    return (2 * tm * tk * in_isz          # x tile
            + 2 * tn * tk * in_isz        # W tile (native (N, K) layout)
            + 2 * tn * in_isz             # bias tile
            + 2 * tm * tn * out_isz       # output tile
            + tm * tn * 4)                # f32 accumulator scratch


def _linear_relu_kernel(x_ref, w_ref, b_ref, o_ref, acc_ref, *, mxu_dtype):
    # x_ref: (tm, tk)   w_ref: (tn, tk)   b_ref: (1, tn)
    # o_ref: (tm, tn)   acc_ref: (tm, tn) f32 scratch (resident across k)
    k = pl.program_id(2)

    x = x_ref[...]
    w = w_ref[...]
    if mxu_dtype is not None:
        x = x.astype(mxu_dtype)
        w = w.astype(mxu_dtype)

    # Contract the last dim of both operands: (tm,tk) . (tn,tk)^T -> (tm,tn).
    prod = lax.dot_general(
        x, w,
        dimension_numbers=(((1,), (1,)), ((), ())),
        preferred_element_type=jnp.float32,
    )

    @pl.when(k == 0)
    def _():
        acc_ref[...] = prod            # no zero-init + read-modify-write pass

    @pl.when(k > 0)
    def _():
        acc_ref[...] += prod

    @pl.when(k == pl.num_programs(2) - 1)
    def _():
        out = acc_ref[...] + b_ref[...].astype(jnp.float32)
        o_ref[...] = jnp.maximum(out, 0.0).astype(o_ref.dtype)


def linear_relu(x, weight, bias, *, mxu_dtype=None,
                tm_max=512, tn_max=512, tk_max=None):
    """relu(x @ weight.T + bias); weight: (out_f, in_f), bias: (out_f,)."""
    orig_shape = x.shape
    K = orig_shape[-1]
    N, Kw = weight.shape
    assert Kw == K and bias.shape == (N,)

    M = 1
    for d in orig_shape[:-1]:
        M *= d

    x2 = x.reshape(M, K)
    b2 = bias.reshape(1, N)

    in_isz = jnp.dtype(x.dtype).itemsize
    out_isz = in_isz
    sub = _sublane_multiple(x.dtype)

    # Per-generation VMEM-aware tile sizing.
    vmem_cap = _vmem_capacity_bytes()
    budget = vmem_cap // 2                      # leave headroom for compiler scratch
    if tk_max is None:
        tk_max = 2048 if vmem_cap >= 96 * 1024 * 1024 else 1024

    tm = min(tm_max, _round_up(M, sub))
    tn = min(tn_max, _round_up(N, 128))
    tk = min(tk_max, _round_up(K, 128))

    # Shrink tiles (tk, then tn, then tm) until the double-buffered footprint fits.
    while _tile_vmem_bytes(tm, tn, tk, in_isz, out_isz) > budget:
        if tk > 128:
            tk = _round_up(tk // 2, 128)
        elif tn > 128:
            tn = _round_up(tn // 2, 128)
        elif tm > sub:
            tm = _round_up(max(tm // 2, sub), sub)
        else:
            break

    # Guarantee >= 2 parallel (i, j) grid steps where possible, so both v7x
    # TensorCores get work (harmless elsewhere).
    if pl.cdiv(M, tm) * pl.cdiv(N, tn) < 2:
        tn_half = _round_up(tn // 2, 128)
        tm_half = _round_up(max(tm // 2, sub), sub)
        if tn_half < tn and pl.cdiv(N, tn_half) >= 2:
            tn = tn_half
        elif tm_half < tm and pl.cdiv(M, tm_half) >= 2:
            tm = tm_half

    Mp = _round_up(M, tm)
    Np = _round_up(N, tn)
    Kp = _round_up(K, tk)

    # Pad only what correctness requires (zero K-padding contributes 0 to the
    # accumulation; padded M rows / N cols are sliced off below).
    if (Mp, Kp) != (M, K):
        x2 = jnp.pad(x2, ((0, Mp - M), (0, Kp - K)))
    w2 = weight
    if (Np, Kp) != (N, K):
        w2 = jnp.pad(weight, ((0, Np - N), (0, Kp - K)))
    if Np != N:
        b2 = jnp.pad(b2, ((0, 0), (0, Np - N)))

    grid = (Mp // tm, Np // tn, Kp // tk)

    cost = pl.CostEstimate(
        flops=2 * M * K * N,
        transcendentals=0,
        bytes_accessed=(M * K + N * K + N + M * N) * in_isz,
    )

    out_padded = pl.pallas_call(
        functools.partial(_linear_relu_kernel, mxu_dtype=mxu_dtype),
        out_shape=jax.ShapeDtypeStruct((Mp, Np), x.dtype),
        grid_spec=pltpu.PrefetchScalarGridSpec(
            num_scalar_prefetch=0,
            grid=grid,
            in_specs=[
                pl.BlockSpec((tm, tk), lambda i, j, k: (i, k)),   # x tile
                pl.BlockSpec((tn, tk), lambda i, j, k: (j, k)),   # W tile (native layout)
                pl.BlockSpec((1, tn), lambda i, j, k: (0, j)),    # bias tile
            ],
            out_specs=pl.BlockSpec((tm, tn), lambda i, j, k: (i, j)),
            scratch_shapes=[pltpu.VMEM((tm, tn), jnp.float32)],
        ),
        compiler_params=pltpu.CompilerParams(
            dimension_semantics=("parallel", "parallel", "arbitrary"),
            vmem_limit_bytes=min(int(vmem_cap * 3 // 4), 112 * 1024 * 1024),
        ),
        cost_estimate=cost,
    )(x2, w2, b2)

    out = out_padded[:M, :N]
    return out.reshape(orig_shape[:-1] + (N,))


if __name__ == "__main__":
    key = jax.random.PRNGKey(0)
    kx, kw, kb = jax.random.split(key, 3)

    # Small shapes consistent with nn.Linear(in_f=32, out_f=64) applied to a
    # (batch=2, seq=8, hidden=32) activation.
    batch, seq, in_f, out_f = 2, 8, 32, 64
    x = jax.random.normal(kx, (batch, seq, in_f), dtype=jnp.float32)
    w = jax.random.normal(kw, (out_f, in_f), dtype=jnp.float32) * 0.1
    b = jax.random.normal(kb, (out_f,), dtype=jnp.float32) * 0.1

    out = linear_relu(x, w, b)
    out = jax.block_until_ready(out)

    # Reference: relu(x @ W.T + b)
    ref = jnp.maximum(jnp.einsum("bsk,nk->bsn", x, w) + b, 0.0)
    assert out.shape == (batch, seq, out_f)
    assert jnp.allclose(out, ref, atol=1e-5, rtol=1e-5)
    assert bool(jnp.all(out >= 0.0))

    print("KERNEL_OK")
</pallas_src>

<mosaic_0001>
module attributes {stable_mosaic.version = 11 : i64} {
  func.func @_linear_relu_kernel(%arg0: i32, %arg1: i32, %arg2: i32, %arg3: memref<8x128xf32, #tpu.memory_space<vmem>>, %arg4: memref<128x128xf32, #tpu.memory_space<vmem>>, %arg5: memref<1x128xf32, #tpu.memory_space<vmem>>, %arg6: memref<8x128xf32, #tpu.memory_space<vmem>>, %arg7: memref<8x128xf32, #tpu.memory_space<vmem>>) attributes {dimension_semantics = [#tpu.dimension_semantics<parallel>, #tpu.dimension_semantics<parallel>, #tpu.dimension_semantics<arbitrary>], iteration_bounds = array<i64: 2, 1, 1>, scalar_prefetch = 0 : i64, scratch_operands = 1 : i64, tpu.core_type = #tpu.core_type<tc>, window_params = [{transform_indices = @transform_0, window_bounds = array<i64: 8, 128>}, {transform_indices = @transform_1, window_bounds = array<i64: 128, 128>}, {transform_indices = @transform_2, window_bounds = array<i64: 1, 128>}, {transform_indices = @transform_3, window_bounds = array<i64: 8, 128>}]} {
    %c0 = arith.constant 0 : index
    %c0_0 = arith.constant 0 : index
    %0 = vector.load %arg3[%c0, %c0_0] : memref<8x128xf32, #tpu.memory_space<vmem>>, vector<8x128xf32>
    %c0_1 = arith.constant 0 : index
    %c0_2 = arith.constant 0 : index
    %1 = vector.load %arg4[%c0_1, %c0_2] : memref<128x128xf32, #tpu.memory_space<vmem>>, vector<128x128xf32>
    %cst = arith.constant dense<0.000000e+00> : vector<8x128xf32>
    %2 = tpu.matmul %0, %1, %cst {dimension_numbers = #tpu.dot_dimension_numbers<[1], [1], [0], [0], [0, 0, 1, 0], [], []>} : vector<8x128xf32>, vector<128x128xf32>, vector<8x128xf32> -> vector<8x128xf32>
    %c0_i32 = arith.constant 0 : i32
    %3 = arith.cmpi eq, %arg2, %c0_i32 : i32
    %4 = arith.extui %3 : i1 to i32
    %c0_i32_3 = arith.constant 0 : i32
    %5 = arith.cmpi ne, %4, %c0_i32_3 : i32
    scf.if %5 {
      %c0_8 = arith.constant 0 : index
      %c0_9 = arith.constant 0 : index
      %12 = vector.load %arg7[%c0_8, %c0_9] : memref<8x128xf32, #tpu.memory_space<vmem>>, vector<8x128xf32>
      tpu.vector_store %arg7[%c0_8, %c0_9], %2 {strides = array<i32>} : memref<8x128xf32, #tpu.memory_space<vmem>>, vector<8x128xf32>,
    } else {
    }
    %c0_i32_4 = arith.constant 0 : i32
    %6 = arith.cmpi sgt, %arg2, %c0_i32_4 : i32
    %7 = arith.extui %6 : i1 to i32
    %c0_i32_5 = arith.constant 0 : i32
    %8 = arith.cmpi ne, %7, %c0_i32_5 : i32
    scf.if %8 {
      %c0_8 = arith.constant 0 : index
      %c0_9 = arith.constant 0 : index
      %12 = vector.load %arg7[%c0_8, %c0_9] : memref<8x128xf32, #tpu.memory_space<vmem>>, vector<8x128xf32>
      %13 = arith.addf %12, %2 : vector<8x128xf32>
      %c0_10 = arith.constant 0 : index
      %c0_11 = arith.constant 0 : index
      %14 = vector.load %arg7[%c0_10, %c0_11] : memref<8x128xf32, #tpu.memory_space<vmem>>, vector<8x128xf32>
      tpu.vector_store %arg7[%c0_10, %c0_11], %13 {strides = array<i32>} : memref<8x128xf32, #tpu.memory_space<vmem>>, vector<8x128xf32>,
    } else {
    }
    %c0_i32_6 = arith.constant 0 : i32
    %9 = arith.cmpi eq, %arg2, %c0_i32_6 : i32
    %10 = arith.extui %9 : i1 to i32
    %c0_i32_7 = arith.constant 0 : i32
    %11 = arith.cmpi ne, %10, %c0_i32_7 : i32
    scf.if %11 {
      %c0_8 = arith.constant 0 : index
      %c0_9 = arith.constant 0 : index
      %12 = vector.load %arg7[%c0_8, %c0_9] : memref<8x128xf32, #tpu.memory_space<vmem>>, vector<8x128xf32>
      %c0_10 = arith.constant 0 : index
      %c0_11 = arith.constant 0 : index
      %13 = vector.load %arg5[%c0_10, %c0_11] : memref<1x128xf32, #tpu.memory_space<vmem>>, vector<1x128xf32>
      %14 = vector.broadcast %13 : vector<1x128xf32> to vector<8x128xf32>
      %15 = arith.addf %12, %14 : vector<8x128xf32>
      %cst_12 = arith.constant 0.000000e+00 : f32
      %16 = vector.broadcast %cst_12 : f32 to vector<8x128xf32>
      %17 = arith.maximumf %15, %16 : vector<8x128xf32>
      %c0_13 = arith.constant 0 : index
      %c0_14 = arith.constant 0 : index
      %18 = vector.load %arg6[%c0_13, %c0_14] : memref<8x128xf32, #tpu.memory_space<vmem>>, vector<8x128xf32>
      tpu.vector_store %arg6[%c0_13, %c0_14], %17 {strides = array<i32>} : memref<8x128xf32, #tpu.memory_space<vmem>>, vector<8x128xf32>,
    } else {
    }
    return
  }
  func.func @transform_0(%arg0: i32, %arg1: i32, %arg2: i32) -> (i32, i32) {
    %c0_i32 = arith.constant 0 : i32
    return %arg0, %arg2 : i32, i32
  }
  func.func @transform_1(%arg0: i32, %arg1: i32, %arg2: i32) -> (i32, i32) {
    %c0_i32 = arith.constant 0 : i32
    return %arg1, %arg2 : i32, i32
  }
  func.func @transform_2(%arg0: i32, %arg1: i32, %arg2: i32) -> (i32, i32) {
    %c0_i32 = arith.constant 0 : i32
    %c0_i32_0 = arith.constant 0 : i32
    return %c0_i32, %arg1 : i32, i32
  }
  func.func @transform_3(%arg0: i32, %arg1: i32, %arg2: i32) -> (i32, i32) {
    %c0_i32 = arith.constant 0 : i32
    return %arg0, %arg1 : i32, i32
  }
}

</mosaic_0001>

<bundles_post_ra>
// kernel: tpu_custom_call.1
= control target key start
LH: loop header
LB: loop body
LE: loop exit
PB: predicated region body
PF: predicated region fallthrough
CT: control target
= control target key end

     0   :  { %8 = vsyncpa [#allocation4], 0  ;;  %s1057_s0 = inlined_call_operand.hbm [shape: f32[16,128], index: 0, kind: input, shape index: {}]   ;;  %s1058_s1 = inlined_call_operand.hbm [shape: f32[128,128], index: 1, kind: input, shape index: {}]   ;;  %s1059_s2 = inlined_call_operand.vmem [shape: f32[1,128], index: 2, kind: input, shape index: {}]   ;;  %s1060_s3 = inlined_call_operand.hbm [shape: f32[16,128], index: 3, kind: output, shape index: {}]  }
   0x1   :  { %10 = vsyncpa [#allocation4 + $0x1], 0 }
   0x2   :  { %11 = vsyncpa [#allocation7], 0 }
   0x3   :  { %12 = vsyncpa [#allocation5], 0 }
   0x4   :  { %14 = vsyncpa [#allocation5 + $0x1], 0  ;;  %s833_s12 = smov 0   ;;  %s835_s13 = smov 0  }
   0x5   :  { %s837_s14 = smov 0   ;;  %s839_s15 = smov 0  }
   0x6   :  { %s841_s16 = smov 0   ;;  %s843_s17 = smov 0  }
   0x7 LB: > { %s488_s18 = sadd.s32 4294967295, %s803_s17   ;;  %s489_s19 = sadd.s32 4294967294, %s803_s17   ;;  %s803_s17 = sphi %s843_s17, %s20_s17   ;;  %s799_s16 = sphi %s841_s16, %s1084_s16   ;;  %s795_s15 = sphi %s839_s15, %s1083_s15   ;;  %s791_s14 = sphi %s837_s14, %s1082_s14   ;;  %s787_s13 = sphi %s835_s13, %s1081_s13   ;;  %s783_s12 = sphi %s833_s12, %s1080_s12  }
   0x8   : > { %p61_p0 = scmp.ne.s32.totalorder %s787_s13, %s783_s12  ;;  %p867_p1 = scmp.eq.s32.totalorder %s488_s18, 0 }
   0x9   : > { %p871_p2 = scmp.eq.s32.totalorder %s488_s18, 1  ;;  %p147_p3 = scmp.eq.s32.totalorder %s489_s19, 1 }
   0xa   : > { %s1065_s20 = scalar_select %p867_p1, 1, 0 }
   0xb   : > { %s1066_s21 = scalar_select %p871_p2, 1, 0 }
   0xc   : > { %p877_p4 = por %p867_p1, %p61_p0  ;;  %p490_p5 = scmp.ge.s32.totalorder %s803_s17, 1 }
   0xd   : > { %p882_p6 = por %p147_p3, %p61_p0  ;;  %p154_p7 = scmp.lt.s32.totalorder %s803_s17, 3 }
   0xe   : > { %s1067_s22 = scalar_select %p877_p4, 1, 0 }
   0xf   : > { %s1068_s23 = scalar_select %p882_p6, 1, 0 }
  0x10   : > { %p887_p8 = pnand %p490_p5, %p154_p7  ;;  %s805_s25 = smov [#allocation6]  }
  0x11   : > { %s170_s26 = sshll.u32 %s805_s25, 4  ;;  %s39_s28 = sadd.s32 1, %s799_s16  ;;  %s171_s26 = int_to_ptr.vmem [resolvable:$true] %s170_s26 }
  0x12   : > { %s1069_s24 = scalar_select %p887_p8, 1, 0 }
  0x13   : > { %p589_p9 = pneg %p887_p8  ;;  %s659_s4 = scalar_lea.hbm %s1058_s1, 2048 }
  0x14   : > { %p660_p12 = scmp.ne.s32.totalorder %s1058_s1, %s659_s4  ;;  %p666_p5 = scmp.lt.u32.totalorder %s659_s4, %s1058_s1 }
  0x15   : > { %p896_p11 = pnand %p589_p9, %p867_p1 }
  0x17   : > { %p661_p13 = pneg %p896_p11 }
  0x19   : > { %p662_p0 = pnand %p661_p13, %p660_p12 }
  0x1b   : > { %p663_p3 = pneg %p662_p0 }
  0x1d   : > { %p668_p7 = pnand %p666_p5, %p663_p3 }
  0x1f   : > { %671 = shalt.err (!%p668_p7)
}
  0x20   : > { %s672_s9 = scalar_lea.vmem %s171_s26, 2048  ;;  %p680_p1 = scmp.lt.s32.totalorder %s171_s26, %s171_s26 }
  0x21   : > { %p673_p9 = scmp.ne.s32.totalorder %s171_s26, %s672_s9  ;;  %p681_p4 = scmp.lt.s32.totalorder %s672_s9, %s672_s9 }
  0x23   : > { %p675_p10 = pnand %p673_p9, %p661_p13  ;;  %p682_p8 = por %p681_p4, %p680_p1 }
  0x25   : > { %p676_p6 = pneg %p675_p10 }
  0x27   : > { %p683_p2 = pnand %p682_p8, %p676_p6 }
  0x29   : > { %686 = shalt.err (!%p683_p2)
}
  0x2a   : > { %s806_s10 = smov 128   ;;  %s807_s11 = smov 8  }
  0x2b   : > { %592 = dma.hbm_to_vmem [thread:$0]  (!%p896_p11), %s1058_s1, 2048, %s171_s26, [#allocation7], %s806_s10, %s806_s10, %s807_s11  }
  0x2c   : > { %p41_p1 = scmp.ge.s32.totalorder %s39_s28, 2  ;;  %s48_s25 = sadd.s32 1, %s791_s14 }
  0x2d   : > { %p55_p2 = scmp.ne.s32.totalorder %s791_s14, %s787_s13  ;;  %p56_p4 = scmp.eq.s32.totalorder %s803_s17, 0 }
  0x2e   : > { %s1086_s28 = smov (%p41_p1, %s39_s28), 0  ;;  %p1072_p8 = scmp.ne.s32.totalorder %s1066_s21, 0 }
  0x2f   : > { %p923_p6 = por %p56_p4, %p55_p2  ;;  %s43_s27 = ssub.s32 %s799_s16, %s1086_s28 }
  0x30   : > { %p929_p10 = por %p1072_p8, %p55_p2  ;;  %p602_p12 = scmp.lt.s32.totalorder %s803_s17, 2 }
  0x31   : > { %p46_p11 = scmp.eq.s32.totalorder %s43_s27, 0  ;;  %s190_s26 = sand.u32 1, %s791_s14  }
  0x32   : > { %s494_s4 = sshll.u32 %s190_s26, 3  ;;  %s495_s6 = sshll.u32 %s799_s16, 7 }
  0x33   : > { %s938_s5 = scalar_select %p46_p11, %s791_s14, %s48_s25  }
  0x34   : > { %s944_s9 = scalar_lea.hbm %s1057_s0, %s495_s6  ;;  %s194_s21 = scalar_lea.vmem [#allocation3], %s494_s4 }
  0x35   : > { %s202_s10 = sshll.u32 %s194_s21, 4  ;;  %p950_p13 = pnand %p602_p12, %p923_p6  ;;  %s946_s10 = int_to_ptr.vmem [resolvable:$true] %s202_s10 }
  0x36   : > { %s191_s18 = scalar_lea.sflag [#allocation4], %s190_s26  ;;  %s687_s19 = scalar_lea.hbm %s944_s9, 128 }
  0x37   : > { %p688_p0 = scmp.ne.s32.totalorder %s944_s9, %s687_s19  ;;  %p689_p3 = pneg %p950_p13 }
  0x38   : > { %s692_s4 = scalar_lea.hbm %s1057_s0, 256  ;;  %p693_p9 = scmp.lt.u32.totalorder %s944_s9, %s1057_s0 }
  0x39   : > { %p690_p5 = pnand %p689_p3, %p688_p0  ;;  %p694_p1 = scmp.lt.u32.totalorder %s692_s4, %s687_s19 }
  0x3a   : > { %p696_p4 = scmp.lt.u32.totalorder %s687_s19, %s944_s9 }
  0x3b   : > { %p691_p7 = pneg %p690_p5  ;;  %p695_p2 = por %p694_p1, %p693_p9 }
  0x3d   : > { %p697_p6 = por %p696_p4, %p695_p2 }
  0x3f   : > { %p698_p8 = pnand %p697_p6, %p691_p7 }
  0x41   : > { %701 = shalt.err (!%p698_p8)
}
  0x42   : > { %s702_s26 = scalar_lea.vmem %s946_s10, 128  ;;  %s808_s7 = smov [#allocation3]  }
  0x43   : > { %p703_p12 = scmp.ne.s32.totalorder %s946_s10, %s702_s26  ;;  %s707_s8 = sshll.u32 %s808_s7, 4  ;;  %s708_s8 = int_to_ptr.vmem [resolvable:$false] %s707_s8 }
  0x44   : > { %s709_s21 = scalar_lea.vmem %s708_s8, 256  ;;  %p710_p5 = scmp.lt.s32.totalorder %s946_s10, %s708_s8 }
  0x45   : > { %p705_p11 = pnand %p703_p12, %p689_p3  ;;  %p711_p9 = scmp.lt.s32.totalorder %s709_s21, %s702_s26 }
  0x47   : > { %p706_p0 = pneg %p705_p11  ;;  %p712_p1 = por %p711_p9, %p710_p5 }
  0x49   : > { %p713_p2 = pnand %p712_p1, %p706_p0 }
  0x4b   : > { %716 = shalt.err (!%p713_p2)
}
  0x4c   : > { %596 = dma.hbm_to_vmem [thread:$0]  (!%p950_p13), %s944_s9, 128, %s946_s10, %s191_s18  }
  0x4d   : > { %p1075_p7 = scmp.ne.s32.totalorder %s1069_s24, 0 }
  0x4e   : > { %s982_s19 = sand.u32 (!%p1075_p7), 1, %s787_s13   ;;  %p1076_p3 = scmp.ne.s32.totalorder (!%p1075_p7), %s1067_s22, 0 }
  0x4f   : > { %211 = sbr.rel (%p1075_p7) target bundleno = 387 (0x183), region = 32  ;;  %s497_s25 = sshll.u32 (!%p1075_p7), %s982_s19, 3 }
  0x50   : > { %s214_s27 = scalar_lea.sflag (!%p1075_p7), [#allocation4], %s982_s19  ;;  %s988_s4 = scalar_lea.vmem (!%p1075_p7), [#allocation3], %s497_s25 }
  0x56   : > { %770 = dma.done.wait (%p1076_p3), %s214_s27, 128  }
  0x57   : > { %772 = vsyncadd (%p1076_p3), %s214_s27, 4294967168  ;;  %p1077_p13 = scmp.ne.s32.totalorder %s1065_s20, 0 }
  0x59   : > { %774 = dma.done.wait (%p1077_p13), [#allocation7], 2048  }
  0x5a   : > { %776 = vsyncadd (%p1077_p13), [#allocation7], 4294965248  ;;  %v809_v0 = vmov 0.0|0.0   ;;  %vm810_vm0 = vmmov 0   ;;  %v811_v1 = vmov 0.0   ;;  %v252_v2 = vld [vmem:[#allocation6] sm:$0xff] }
  0x5b   : > { %557 = vmatprep.subr.bf16.mxu0 %v809_v0  ;;  %554 = vmatprep.mubr.msk.f32.mxu0 %vm810_vm0, %v811_v1  ;;  %v253_v3 = vld [vmem:[#allocation6 + $0x8] sm:$0xff]  ;;  %v254_v5 = vld [vmem:[#allocation6 + $0x10] sm:$0xff]  ;;  %v255_v6 = vld [vmem:[#allocation6 + $0x18] sm:$0xff]  ;;  %s502_s24 = sshll.u32 %s795_s15, 7  ;;  %s246_s9 = scalar_lea.vmem [#allocation8], %s497_s25 }
  0x5c   : > { %v558_v4 = vpack.c.bf16 %v253_v3, %v252_v2  ;;  %v561_v7 = vpack.c.bf16 %v255_v6, %v254_v5  ;;  %v256_v8 = vld [vmem:[#allocation6 + $0x20] sm:$0xff]  ;;  %v257_v9 = vld [vmem:[#allocation6 + $0x28] sm:$0xff]  ;;  %v258_v11 = vld [vmem:[#allocation6 + $0x30] sm:$0xff]  ;;  %s379_s10 = sshll.u32 %s246_s9, 4  ;;  %s1008_s29 = scalar_lea.hbm %s1060_s3, %s502_s24  ;;  %s1010_s10 = int_to_ptr.vmem [resolvable:$true] %s379_s10 }
  0x5d   : > { %v564_v10 = vpack.c.bf16 %v257_v9, %v256_v8  ;;  %v259_v12 = vld [vmem:[#allocation6 + $0x38] sm:$0xff]  ;;  %v260_v14 = vld [vmem:[#allocation6 + $0x40] sm:$0xff]  ;;  %v261_v15 = vld [vmem:[#allocation6 + $0x48] sm:$0xff]  ;;  %s365_s6 = scalar_lea.sflag [#allocation5], %s982_s19  ;;  %s717_s26 = scalar_lea.vmem %s1010_s10, 128 }
  0x5e   : > { %559 = vmatpush3.bf16.xpose.msra.mxu0 %v558_v4  ;;  %v567_v13 = vpack.c.bf16 %v259_v12, %v258_v11  ;;  %v570_v16 = vpack.c.bf16 %v261_v15, %v260_v14  ;;  %v262_v17 = vld [vmem:[#allocation6 + $0x50] sm:$0xff]  ;;  %v263_v18 = vld [vmem:[#allocation6 + $0x58] sm:$0xff]  ;;  %v264_v20 = vld [vmem:[#allocation6 + $0x60] sm:$0xff]  ;;  %p718_p4 = scmp.ne.s32.totalorder %s1010_s10, %s717_s26  ;;  %s812_s15 = smov [#allocation8]  }
  0x5f   : > { %560 = vmatprep.subr.bf16.mxu0 %v809_v0  ;;  %v573_v19 = vpack.c.bf16 %v263_v18, %v262_v17  ;;  %v265_v21 = vld [vmem:[#allocation6 + $0x68] sm:$0xff]  ;;  %v266_v23 = vld [vmem:[#allocation6 + $0x70] sm:$0xff]  ;;  %v267_v24 = vld [vmem:[#allocation6 + $0x78] sm:$0xff]  ;;  %s721_s7 = sshll.u32 %s812_s15, 4  ;;  %s722_s7 = int_to_ptr.vmem [resolvable:$false] %s721_s7 }
  0x60   : > { %v576_v22 = vpack.c.bf16 %v265_v21, %v264_v20  ;;  %v579_v25 = vpack.c.bf16 %v267_v24, %v266_v23  ;;  %v251_v26 = vld [vmem:[%s988_s4] sm:$0xff]  ;;  %p719_p6 = pnand %p718_p4, %p929_p10  ;;  %s723_s8 = scalar_lea.vmem %s722_s7, 256 }
  0x61   : > { %v500_v27 = vld [vmem:[%s1059_s2] ss:$0 sm:$0xff]  ;;  %p724_p12 = scmp.lt.s32.totalorder %s1010_s10, %s722_s7  ;;  %p725_p11 = scmp.lt.s32.totalorder %s723_s8, %s717_s26 }
  0x62   : > { %p720_p8 = pneg %p719_p6 }
  0x63   : > { %p726_p0 = por %p725_p11, %p724_p12 }
  0x65   : > { %p727_p5 = pnand %p726_p0, %p720_p8 }
  0x66   : > { %562 = vmatpush3.bf16.xpose.msra.mxu0 %v561_v7 }
  0x67   : > { %563 = vmatprep.subr.bf16.mxu0 %v809_v0 }
  0x6e   : > { %565 = vmatpush3.bf16.xpose.msra.mxu0 %v564_v10 }
  0x6f   : > { %566 = vmatprep.subr.bf16.mxu0 %v809_v0 }
  0x76   : > { %568 = vmatpush3.bf16.xpose.msra.mxu0 %v567_v13 }
  0x77   : > { %569 = vmatprep.subr.bf16.mxu0 %v809_v0 }
  0x7e   : > { %571 = vmatpush3.bf16.xpose.msra.mxu0 %v570_v16 }
  0x7f   : > { %572 = vmatprep.subr.bf16.mxu0 %v809_v0 }
  0x86   : > { %574 = vmatpush3.bf16.xpose.msra.mxu0 %v573_v19 }
  0x87   : > { %575 = vmatprep.subr.bf16.mxu0 %v809_v0 }
  0x8e   : > { %577 = vmatpush3.bf16.xpose.msra.mxu0 %v576_v22 }
  0x8f   : > { %578 = vmatprep.subr.bf16.mxu0 %v809_v0 }
  0x96   : > { %580 = vmatpush3.bf16.xpose.msra.mxu0 %v579_v25 }
  0x9d   : > { %555 = vmatmul.mubr.f32.vlgmr.msra.gmra.mrb[0].mxu0 %v251_v26 }
 0x170   : > { %v334_v28 = vpop.f32.mrb[0].mxu0 }
 0x171   : > { %v361_v29 = vadd.f32 %v500_v27, %v334_v28  ;;  %v556_v30 = vpop.f32.mrb[1].mxu0 }
 0x173   : > { %v362_v31 = vmax.f32 %v361_v29, 0.0 }
 0x175   : > { %363 = vst [vmem:[%s246_s9] sm:$0xff] %v362_v31 }
 0x176   : > { %730 = shalt.err (!%p727_p5)
}
 0x177   : > { %s731_s21 = scalar_lea.hbm %s1008_s29, 128  ;;  %s735_s27 = scalar_lea.hbm %s1060_s3, 256 }
 0x178   : > { %p732_p9 = scmp.ne.s32.totalorder %s1008_s29, %s731_s21  ;;  %p736_p7 = scmp.lt.u32.totalorder %s1008_s29, %s1060_s3 }
 0x179   : > { %p737_p3 = scmp.lt.u32.totalorder %s735_s27, %s731_s21  ;;  %p739_p4 = scmp.lt.u32.totalorder %s731_s21, %s1008_s29 }
 0x17a   : > { %p733_p1 = pnand %p732_p9, %p929_p10 }
 0x17b   : > { %p738_p13 = por %p737_p3, %p736_p7 }
 0x17c   : > { %p734_p2 = pneg %p733_p1 }
 0x17d   : > { %p740_p6 = por %p739_p4, %p738_p13 }
 0x17f   : > { %p741_p8 = pnand %p740_p6, %p734_p2 }
 0x181   : > { %744 = shalt.err (!%p741_p8)
}
 0x182   : > { %587 = dma.vmem_to_hbm [thread:$0]  (%p929_p10), %s1010_s10, 128, %s1008_s29, %s365_s6  }
 0x183 PF: > { %s391_s22 = sand.u32 1, %s783_s12   ;;  %p1078_p12 = scmp.ne.s32.totalorder %s1068_s23, 0 }
 0x184   : > { %p1079_p11 = scmp.ge.s32.totalorder %s803_s17, 2  ;;  %s392_s24 = scalar_lea.sflag [#allocation5], %s391_s22 }
 0x186   : > { %p598_p0 = pnand %p1079_p11, %p1078_p12 }
 0x188   : > { %778 = dma.done.wait (!%p598_p0), %s392_s24, 128  }
 0x189   : > { %780 = vsyncadd (!%p598_p0), %s392_s24, 4294967168  ;;  %s20_s17 = sadd.s32 1, %s803_s17   ;;  %s1080_s12 = smov %s787_s13 }
 0x18a   : > { %p17_p5 = scmp.ge.s32.totalorder %s20_s17, 4   ;;  %s1081_s13 = smov %s791_s14 }
 0x18b   : > { %s1082_s14 = smov %s938_s5  ;;  %s1083_s15 = smov %s799_s16 }
 0x18c   : > { %s1084_s16 = smov %s1086_s28  ;;  %19 = sbr.rel (!%p17_p5) target bundleno = 7 (0x7), region = 97 }
 0x193   :  { %397 = vsyncpa [#allocation4], 1 }
 0x194   :  { %399 = vsyncpa [#allocation4 + $0x1], 1 }
 0x195   :  { %400 = vsyncpa [#allocation7], 1 }
 0x196   :  { %401 = vsyncpa [#allocation5], 1 }
 0x197   :  { %403 = vsyncpa [#allocation5 + $0x1], 1 }

</bundles_post_ra>
